<compile_context>
chip_gen: v7x
topology: tpu7x:2x2x1
jax: 0.10.0
libtpu: 0.0.40
codegen_flags: <defaults>
</compile_context>

<pallas_src>
import jax
import jax.numpy as jnp
from jax import lax
from jax.experimental import pallas as pl
from jax.experimental.pallas import tpu as pltpu

# ---- "MarianConfig" fields the module uses (small synthetic sizes) ----
VOCAB_SIZE = 64
D_MODEL = 32
MAX_POSITION_EMBEDDINGS = 32
PAD_TOKEN_ID = 0
LAYER_NORM_EPS = 1e-5
# dropout: implemented as identity (eval mode).


def _marian_embeddings_kernel(ids_ref,      # SMEM (B, S) int32   -- scalar-prefetched token ids
                              we_ref,       # HBM  (V, D)         -- word-embedding table (ANY)
                              pe_ref,       # VMEM (TS, D) f32    -- positional tile for this seq tile
                              gamma_ref,    # VMEM (1, D)  f32    -- LayerNorm weight
                              beta_ref,     # VMEM (1, D)  f32    -- LayerNorm bias
                              out_ref,      # VMEM (TS, D) f32    -- output tile (batch dim squeezed)
                              staging_ref,  # VMEM (TS, D) scratch -- gathered embedding rows
                              sems):        # DMA semaphores (TS,)
    b = pl.program_id(0)
    s = pl.program_id(1)
    TS, D = staging_ref.shape
    s_start = s * TS

    # --- row gather: one small DMA per token, all issued before any wait so they overlap ---
    @pl.loop(0, TS)
    def _issue(t):
        tok = ids_ref[b, s_start + t]
        pltpu.make_async_copy(we_ref.at[pl.ds(tok, 1)],
                              staging_ref.at[pl.ds(t, 1)],
                              sems.at[t]).start()

    @pl.loop(0, TS)
    def _wait(t):
        # src slice only supplies the byte count for the wait; offset is irrelevant.
        pltpu.make_async_copy(we_ref.at[pl.ds(0, 1)],
                              staging_ref.at[pl.ds(t, 1)],
                              sems.at[t]).wait()

    # --- positional add: plain VPU add, tile shapes already match (no jnp.tile) ---
    x = staging_ref[...].astype(jnp.float32) + pe_ref[...]          # (TS, D)

    # --- LayerNorm over hidden dim, fused single-pass statistics (f32) ---
    mean = jnp.mean(x, axis=-1, keepdims=True)
    mean_sq = jnp.mean(x * x, axis=-1, keepdims=True)
    var = mean_sq - mean * mean
    y = (x - mean) * lax.rsqrt(var + LAYER_NORM_EPS)
    y = y * gamma_ref[0, :] + beta_ref[0, :]

    # Dropout is identity (eval mode).  Direct (TS, D) store — no relayouting reshape.
    out_ref[...] = y.astype(out_ref.dtype)


@jax.jit
def marian_embeddings(input_ids, word_emb, pos_emb, gamma, beta):
    B, S = input_ids.shape
    V, D = word_emb.shape

    # Token tile along the sequence axis (multiple of 8 sublanes; full S at these demo sizes).
    TS = S if S <= 128 else 128
    assert S % TS == 0

    out = pl.pallas_call(
        _marian_embeddings_kernel,
        out_shape=jax.ShapeDtypeStruct((B, S, D), jnp.float32),
        grid_spec=pltpu.PrefetchScalarGridSpec(
            num_scalar_prefetch=1,                       # ids -> SMEM, passed first to kernel
            grid=(B, S // TS),
            in_specs=[
                pl.BlockSpec(memory_space=pl.ANY),                    # word_emb stays in HBM
                pl.BlockSpec((TS, D), lambda b, s, ids: (s, 0)),      # positional tile
                pl.BlockSpec((1, D), lambda b, s, ids: (0, 0)),       # LayerNorm weight
                pl.BlockSpec((1, D), lambda b, s, ids: (0, 0)),       # LayerNorm bias
            ],
            out_specs=pl.BlockSpec((None, TS, D), lambda b, s, ids: (b, s, 0)),
            scratch_shapes=[
                pltpu.VMEM((TS, D), word_emb.dtype),                  # gather staging
                pltpu.SemaphoreType.DMA((TS,)),                       # one sem per row DMA
            ],
        ),
        compiler_params=pltpu.CompilerParams(
            dimension_semantics=("parallel", "parallel"),             # megacore on v7x
            vmem_limit_bytes=32 * 1024 * 1024,                        # explicit, ample headroom
        ),
    )(input_ids.astype(jnp.int32), word_emb, pos_emb[:S],
      gamma.reshape(1, D), beta.reshape(1, D))

    return out


def _reference(input_ids, word_emb, pos_emb, gamma, beta):
    """Plain-JAX reference matching the PyTorch forward (dropout = identity)."""
    S = input_ids.shape[1]
    x = word_emb[input_ids] + pos_emb[:S][None, :, :]
    mean = x.mean(-1, keepdims=True)
    var = ((x - mean) ** 2).mean(-1, keepdims=True)
    return (x - mean) / jnp.sqrt(var + LAYER_NORM_EPS) * gamma + beta


if __name__ == "__main__":
    key = jax.random.PRNGKey(0)
    k_ids, k_we, k_pe, k_g, k_b = jax.random.split(key, 5)

    B, S = 2, 8  # small shapes consistent with the module's forward

    # Deterministic parameter init (shapes per MarianEmbeddings.__init__)
    word_emb = 0.02 * jax.random.normal(k_we, (VOCAB_SIZE, D_MODEL), jnp.float32)
    word_emb = word_emb.at[PAD_TOKEN_ID].set(0.0)  # nn.Embedding(padding_idx=...) zeroes this row
    pos_emb = 0.02 * jax.random.normal(k_pe, (MAX_POSITION_EMBEDDINGS, D_MODEL), jnp.float32)
    gamma = 1.0 + 0.1 * jax.random.normal(k_g, (D_MODEL,), jnp.float32)
    beta = 0.1 * jax.random.normal(k_b, (D_MODEL,), jnp.float32)

    input_ids = jax.random.randint(k_ids, (B, S), 0, VOCAB_SIZE, dtype=jnp.int32)

    out = marian_embeddings(input_ids, word_emb, pos_emb, gamma, beta)
    out = jax.block_until_ready(out)

    ref = _reference(input_ids, word_emb, pos_emb, gamma, beta)
    assert out.shape == (B, S, D_MODEL), out.shape
    assert jnp.allclose(out, ref, atol=1e-5, rtol=1e-5), float(jnp.abs(out - ref).max())

    print("KERNEL_OK")
</pallas_src>

<mosaic_0001>
module attributes {stable_mosaic.version = 11 : i64} {
  func.func @_marian_embeddings_kernel(%arg0: i32, %arg1: i32, %arg2: memref<2x8xi32, #tpu.memory_space<smem>>, %arg3: memref<64x32xf32, #tpu.memory_space<any>>, %arg4: memref<8x32xf32, #tpu.memory_space<vmem>>, %arg5: memref<1x32xf32, #tpu.memory_space<vmem>>, %arg6: memref<1x32xf32, #tpu.memory_space<vmem>>, %arg7: memref<1x8x32xf32, #tpu.memory_space<vmem>>, %arg8: memref<8x32xf32, #tpu.memory_space<vmem>>, %arg9: memref<8x!tpu.dma_semaphore, #tpu.memory_space<semaphore_mem>>) attributes {dimension_semantics = [#tpu.dimension_semantics<parallel>, #tpu.dimension_semantics<parallel>], iteration_bounds = array<i64: 2, 1>, scalar_prefetch = 1 : i64, scratch_operands = 2 : i64, tpu.core_type = #tpu.core_type<tc>, window_params = [{}, {transform_indices = @transform_1, window_bounds = array<i64: 8, 32>}, {pipeline_mode = #tpu.pipeline_mode<synchronous>, transform_indices = @transform_2, window_bounds = array<i64: 1, 32>}, {pipeline_mode = #tpu.pipeline_mode<synchronous>, transform_indices = @transform_3, window_bounds = array<i64: 1, 32>}, {transform_indices = @transform_4, window_bounds = array<i64: 1, 8, 32>}]} {
    %c8_i32 = arith.constant 8 : i32
    %0 = arith.muli %arg1, %c8_i32 : i32
    %c0_i32 = arith.constant 0 : i32
    %c8_i32_0 = arith.constant 8 : i32
    %1 = arith.addi %c0_i32, %c8_i32_0 : i32
    %c1_i32 = arith.constant 1 : i32
    scf.for %arg10 = %c0_i32 to %1 step %c1_i32  : i32 {
      %c1_i32_20 = arith.constant 1 : i32
      %37 = arith.muli %arg10, %c1_i32_20 : i32
      %c0_i32_21 = arith.constant 0 : i32
      %38 = arith.addi %c0_i32_21, %37 : i32
      %39 = arith.addi %0, %38 : i32
      %40 = arith.index_cast %arg0 : i32 to index
      %41 = arith.index_cast %39 : i32 to index
      %42 = memref.load %arg2[%40, %41] : memref<2x8xi32, #tpu.memory_space<smem>>
      %c0_i32_22 = arith.constant 0 : i32
      %43 = tpu.memref_slice %arg3[%42, %c0_i32_22] : memref<64x32xf32, #tpu.memory_space<any>> -> memref<1x32xf32, #tpu.memory_space<any>>
      %c0_i32_23 = arith.constant 0 : i32
      %44 = tpu.memref_slice %arg8[%38, %c0_i32_23] : memref<8x32xf32, #tpu.memory_space<vmem>> -> memref<1x32xf32, #tpu.memory_space<vmem>>
      %45 = tpu.memref_slice %arg9[%38] : memref<8x!tpu.dma_semaphore, #tpu.memory_space<semaphore_mem>> -> memref<1x!tpu.dma_semaphore, #tpu.memory_space<semaphore_mem>>
      %46 = tpu.memref_squeeze %45 : memref<1x!tpu.dma_semaphore, #tpu.memory_space<semaphore_mem>> -> memref<!tpu.dma_semaphore, #tpu.memory_space<semaphore_mem>>
      tpu.enqueue_dma source(%43 : memref<1x32xf32, #tpu.memory_space<any>>) target(%44 : memref<1x32xf32, #tpu.memory_space<vmem>>) target_semaphore(%46 : memref<!tpu.dma_semaphore, #tpu.memory_space<semaphore_mem>>)
    }
    %c8_i32_1 = arith.constant 8 : i32
    %c0_i32_2 = arith.constant 0 : i32
    %c8_i32_3 = arith.constant 8 : i32
    %2 = arith.addi %c0_i32_2, %c8_i32_3 : i32
    %c1_i32_4 = arith.constant 1 : i32
    scf.for %arg10 = %c0_i32_2 to %2 step %c1_i32_4  : i32 {
      %c1_i32_20 = arith.constant 1 : i32
      %37 = arith.muli %arg10, %c1_i32_20 : i32
      %c0_i32_21 = arith.constant 0 : i32
      %38 = arith.addi %c0_i32_21, %37 : i32
      %c0_i32_22 = arith.constant 0 : i32
      %c0_i32_23 = arith.constant 0 : i32
      %39 = tpu.memref_slice %arg3[%c0_i32_22, %c0_i32_23] : memref<64x32xf32, #tpu.memory_space<any>> -> memref<1x32xf32, #tpu.memory_space<any>>
      %c0_i32_24 = arith.constant 0 : i32
      %40 = tpu.memref_slice %arg8[%38, %c0_i32_24] : memref<8x32xf32, #tpu.memory_space<vmem>> -> memref<1x32xf32, #tpu.memory_space<vmem>>
      %41 = tpu.memref_slice %arg9[%38] : memref<8x!tpu.dma_semaphore, #tpu.memory_space<semaphore_mem>> -> memref<1x!tpu.dma_semaphore, #tpu.memory_space<semaphore_mem>>
      %42 = tpu.memref_squeeze %41 : memref<1x!tpu.dma_semaphore, #tpu.memory_space<semaphore_mem>> -> memref<!tpu.dma_semaphore, #tpu.memory_space<semaphore_mem>>
      tpu.wait_dma2 semaphore(%42 : memref<!tpu.dma_semaphore, #tpu.memory_space<semaphore_mem>>) src(%39 : memref<1x32xf32, #tpu.memory_space<any>>) dst(%40 : memref<1x32xf32, #tpu.memory_space<vmem>>)
    }
    %c8_i32_5 = arith.constant 8 : i32
    %c0 = arith.constant 0 : index
    %c0_6 = arith.constant 0 : index
    %3 = vector.load %arg8[%c0, %c0_6] : memref<8x32xf32, #tpu.memory_space<vmem>>, vector<8x32xf32>
    %c0_7 = arith.constant 0 : index
    %c0_8 = arith.constant 0 : index
    %4 = vector.load %arg4[%c0_7, %c0_8] : memref<8x32xf32, #tpu.memory_space<vmem>>, vector<8x32xf32>
    %5 = arith.addf %3, %4 : vector<8x32xf32>
    %cst = arith.constant dense<0.000000e+00> : vector<8xf32>
    %6 = vector.multi_reduction <add>, %5, %cst [1] : vector<8x32xf32> to vector<8xf32>
    %7 = vector.shape_cast %6 : vector<8xf32> to vector<8x1xf32>
    %cst_9 = arith.constant 3.200000e+01 : f32
    %8 = vector.broadcast %cst_9 : f32 to vector<8x1xf32>
    %9 = arith.divf %7, %8 : vector<8x1xf32>
    %10 = arith.mulf %5, %5 : vector<8x32xf32>
    %cst_10 = arith.constant dense<0.000000e+00> : vector<8xf32>
    %11 = vector.multi_reduction <add>, %10, %cst_10 [1] : vector<8x32xf32> to vector<8xf32>
    %12 = vector.shape_cast %11 : vector<8xf32> to vector<8x1xf32>
    %cst_11 = arith.constant 3.200000e+01 : f32
    %13 = vector.broadcast %cst_11 : f32 to vector<8x1xf32>
    %14 = arith.divf %12, %13 : vector<8x1xf32>
    %15 = arith.mulf %9, %9 : vector<8x1xf32>
    %16 = arith.subf %14, %15 : vector<8x1xf32>
    %17 = vector.broadcast %9 : vector<8x1xf32> to vector<8x32xf32>
    %18 = arith.subf %5, %17 : vector<8x32xf32>
    %cst_12 = arith.constant 9.99999974E-6 : f32
    %19 = vector.broadcast %cst_12 : f32 to vector<8x1xf32>
    %20 = arith.addf %16, %19 : vector<8x1xf32>
    %21 = math.rsqrt %20 : vector<8x1xf32>
    %22 = vector.broadcast %21 : vector<8x1xf32> to vector<8x32xf32>
    %23 = arith.mulf %18, %22 : vector<8x32xf32>
    %c0_13 = arith.constant 0 : index
    %c0_14 = arith.constant 0 : index
    %24 = vector.load %arg5[%c0_13, %c0_14] : memref<1x32xf32, #tpu.memory_space<vmem>>, vector<1x32xf32>
    %25 = vector.shape_cast %24 : vector<1x32xf32> to vector<32xf32>
    %26 = vector.shape_cast %25 : vector<32xf32> to vector<1x32xf32>
    %27 = vector.broadcast %26 : vector<1x32xf32> to vector<8x32xf32>
    %28 = arith.mulf %23, %27 : vector<8x32xf32>
    %c0_15 = arith.constant 0 : index
    %c0_16 = arith.constant 0 : index
    %29 = vector.load %arg6[%c0_15, %c0_16] : memref<1x32xf32, #tpu.memory_space<vmem>>, vector<1x32xf32>
    %30 = vector.shape_cast %29 : vector<1x32xf32> to vector<32xf32>
    %31 = vector.shape_cast %30 : vector<32xf32> to vector<1x32xf32>
    %32 = vector.broadcast %31 : vector<1x32xf32> to vector<8x32xf32>
    %33 = arith.addf %28, %32 : vector<8x32xf32>
    %c0_17 = arith.constant 0 : index
    %c0_18 = arith.constant 0 : index
    %c0_19 = arith.constant 0 : index
    %34 = vector.load %arg7[%c0_17, %c0_18, %c0_19] : memref<1x8x32xf32, #tpu.memory_space<vmem>>, vector<1x8x32xf32>
    %35 = vector.shape_cast %34 : vector<1x8x32xf32> to vector<8x32xf32>
    %36 = vector.shape_cast %33 : vector<8x32xf32> to vector<1x8x32xf32>
    tpu.vector_store %arg7[%c0_17, %c0_18, %c0_19], %36 {strides = array<i32>} : memref<1x8x32xf32, #tpu.memory_space<vmem>>, vector<1x8x32xf32>,
    return
  }
  func.func @transform_1(%arg0: i32, %arg1: i32, %arg2: memref<2x8xi32, #tpu.memory_space<smem>>) -> (i32, i32) {
    %c0_i32 = arith.constant 0 : i32
    %c0_i32_0 = arith.constant 0 : i32
    return %arg1, %c0_i32 : i32, i32
  }
  func.func @transform_2(%arg0: i32, %arg1: i32, %arg2: memref<2x8xi32, #tpu.memory_space<smem>>) -> (i32, i32) {
    %c0_i32 = arith.constant 0 : i32
    %c0_i32_0 = arith.constant 0 : i32
    %c0_i32_1 = arith.constant 0 : i32
    return %c0_i32, %c0_i32_0 : i32, i32
  }
  func.func @transform_3(%arg0: i32, %arg1: i32, %arg2: memref<2x8xi32, #tpu.memory_space<smem>>) -> (i32, i32) {
    %c0_i32 = arith.constant 0 : i32
    %c0_i32_0 = arith.constant 0 : i32
    %c0_i32_1 = arith.constant 0 : i32
    return %c0_i32, %c0_i32_0 : i32, i32
  }
  func.func @transform_4(%arg0: i32, %arg1: i32, %arg2: memref<2x8xi32, #tpu.memory_space<smem>>) -> (i32, i32, i32) {
    %c0_i32 = arith.constant 0 : i32
    %c0_i32_0 = arith.constant 0 : i32
    return %arg0, %arg1, %c0_i32 : i32, i32, i32
  }
}

</mosaic_0001>

<bundles_post_ra>
// kernel: marian_embeddings.1
= control target key start
LH: loop header
LB: loop body
LE: loop exit
PB: predicated region body
PF: predicated region fallthrough
CT: control target
= control target key end

     0   :  { %s839_s0 = inlined_call_operand.vmem [shape: s32[2,8], index: 0, kind: input, shape index: {}]   ;;  %s840_s1 = inlined_call_operand.vmem [shape: f32[64,32], index: 1, kind: input, shape index: {}]   ;;  %s841_s2 = inlined_call_operand.vmem [shape: f32[8,32], index: 2, kind: input, shape index: {}]   ;;  %s842_s3 = inlined_call_operand.vmem [shape: f32[1,32], index: 3, kind: input, shape index: {}]   ;;  %s843_s4 = inlined_call_operand.vmem [shape: f32[1,32], index: 4, kind: input, shape index: {}]   ;;  %s844_s5 = inlined_call_operand.hbm [shape: f32[2,8,32], index: 5, kind: output, shape index: {}]  }
   0x1   :  { %s10_s20 = sshll.u32 %s839_s0, 4  ;;  %s11_s20 = int_to_ptr.vmem [resolvable:$true] %s10_s20 }
   0x2   :  { %s558_s21 = scalar_lea.vmem %s11_s20, 32  ;;  %p563_p1 = scmp.lt.s32.totalorder %s11_s20, %s11_s20 }
   0x3   :  { %p559_p0 = scmp.ne.s32.totalorder %s11_s20, %s558_s21  ;;  %p564_p2 = scmp.lt.s32.totalorder %s558_s21, %s558_s21 }
   0x5   :  { %p565_p3 = por %p564_p2, %p563_p1 }
   0x7   :  { %p566_p4 = pnand %p565_p3, %p559_p0 }
   0x9   :  { %569 = shalt.err (!%p566_p4)  }
   0xa   :  { %s670_s22 = smov [#allocation5]  }
   0xb   :  { %13 = dma.vmem_to_smem %s11_s20, 32, %s670_s22, [#allocation4] }
   0xc   :  { %630 = dma.done.wait [#allocation4], 32 }
   0xd   :  { %631 = vsyncadd [#allocation4], 4294967264 }
   0xe   :  { %15 = sfence }
   0xf   :  { %16 = vsyncpa [#allocation7], 0 }
  0x10   :  { %18 = vsyncpa [#allocation7 + $0x1], 0  ;;  %s705_s23 = smov 0   ;;  %s707_s24 = smov 0  }
  0x11   :  { %s709_s0 = smov 0   ;;  %s711_s25 = smov 0  }
  0x12   :  { %s713_s26 = smov 0   ;;  %s715_s27 = smov 0  }
  0x13 LB: > { %s463_s28 = sadd.s32 4294967295, %s660_s27   ;;  %s464_s29 = sadd.s32 4294967294, %s660_s27   ;;  %s660_s27 = sphi %s715_s27, %s24_s27   ;;  %s656_s26 = sphi %s713_s26, %s851_s26   ;;  %s652_s25 = sphi %s711_s25, %s850_s25   ;;  %s648_s0 = sphi %s709_s0, %s849_s0   ;;  %s644_s24 = sphi %s707_s24, %s848_s24   ;;  %s640_s23 = sphi %s705_s23, %s847_s23  }
  0x14   : > { %s36_s30 = sadd.s32 1, %s656_s26  ;;  %s113_s6 = sadd.s32 1, %s648_s0 }
  0x15   : > { %p38_p5 = scmp.ge.s32.totalorder %s36_s30, 2  ;;  %p123_p6 = scmp.ne.s32.totalorder %s648_s0, %s644_s24 }
  0x16   : > { %p124_p7 = scmp.eq.s32.totalorder %s463_s28, 1  ;;  %p129_p8 = scmp.ne.s32.totalorder %s644_s24, %s640_s23 }
  0x17   : > { %s853_s30 = smov (%p38_p5, %s36_s30), 0  ;;  %p130_p10 = scmp.eq.s32.totalorder %s464_s29, 1 }
  0x18   : > { %p745_p9 = por %p124_p7, %p123_p6  ;;  %s108_s8 = ssub.s32 %s656_s26, %s853_s30 }
  0x19   : > { %p467_p11 = scmp.ge.s32.totalorder %s660_s27, 1  ;;  %p111_p12 = scmp.eq.s32.totalorder %s108_s8, 0 }
  0x1a   : > { %p752_p13 = por %p130_p10, %p129_p8  ;;  %p161_p0 = scmp.lt.s32.totalorder %s660_s27, 3 }
  0x1b   : > { %s758_s10 = scalar_select %p111_p12, %s648_s0, %s113_s6  }
  0x1c   : > { %p162_p1 = pnand %p467_p11, %p161_p0 }
  0x1d   : > { %s181_s11 = sand.u32 (!%p162_p1), 1, %s644_s24   ;;  %s662_s14 = smov (!%p162_p1), 0  }
  0x1e   : > { %165 = sbr.rel (%p162_p1) target bundleno = 252 (0xfc), region = 32  ;;  %s763_s12 = sshll.u32 (!%p162_p1), %s181_s11, 3 }
  0x1f   : > { %s183_s13 = scalar_lea.vmem (!%p162_p1), [#allocation6], %s763_s12 }
  0x25 LB: >> { %s196_s15 = sshra.s32 %s664_s14, 7  ;;  %s201_s16 = sand.u32 127, %s664_s14  ;;  %s664_s14 = sphi %s662_s14, %s194_s14  }
  0x26   : >> { %s198_s17 = sadd.s32 %s652_s25, %s196_s15  ;;  %s205_s29 = scalar_lea.vmem [#allocation2], %s664_s14 }
  0x27   : >> { %s469_s18 = sshll.u32 %s198_s17, 7  ;;  %s206_s6 = scalar_lea.sflag [#allocation3], %s664_s14 }
  0x28   : >> { %s202_s19 = sadd.s32 %s469_s18, %s201_s16 }
  0x29   : >> { %s203_s20 = sld [smem:[#allocation5 + %s202_s19]] }
  0x2f   : >> { %s204_s28 = scalar_lea.vmem %s840_s1, %s203_s20 }
  0x30   : >> { %v224_v0 = vld [vmem:[%s204_s28] sm:$0x1] }
  0x31   : >> { %225 = vst [vmem:[%s205_s29] sm:$0x1] %v224_v0 }
  0x32   : >> { %250 = vsyncadd %s206_s6, 16  ;;  %s194_s14 = sadd.s32 1, %s664_s14  }
  0x33   : >> { %p191_p2 = scmp.ge.s32.totalorder %s194_s14, 8  }
  0x34   : > { %s666_s8 = smov (%p191_p2), 0  }
  0x35   : > { %193 = sbr.rel (!%p191_p2) target bundleno = 37 (0x25), region = 132 }
  0x3c LB: >> { %s257_s15 = scalar_lea.sflag [#allocation3], %s668_s8  ;;  %s668_s8 = sphi %s666_s8, %s256_s8  }
  0x3d   : >> { %632 = dma.done.wait %s257_s15, 16 }
  0x3e   : >> { %633 = vsyncadd %s257_s15, 4294967280  ;;  %s256_s8 = sadd.s32 1, %s668_s8  }
  0x3f   : >> { %p253_p3 = scmp.ge.s32.totalorder %s256_s8, 8  }
  0x40   : > { %v261_v1 = vld [vmem:[#allocation2] sm:$0xff] (%p253_p3)  ;;  %vm264_vm0 = vcmask (%p253_p3), 261120   ;;  %s473_s21 = sshll.u32 (%p253_p3), %s652_s25, 7  ;;  %s313_s22 = sshll.u32 (%p253_p3), %s183_s13, 4  ;;  %s789_s22 = int_to_ptr.vmem [resolvable:$true] %s313_s22 }
  0x41   : > { %255 = sbr.rel (!%p253_p3) target bundleno = 60 (0x3c), region = 143  ;;  %v262_v2 = vld [vmem:[%s841_s2] sm:$0xff] (%p253_p3)  ;;  %s787_s6 = scalar_lea.hbm (%p253_p3), %s844_s5, %s473_s21 }
  0x42   : > { %v263_v3 = vadd.f32 (%p253_p3), %v262_v2, %v261_v1  ;;  %v470_v16 = vld [vmem:[%s842_s3] ss:$0 sm:$0xff] (%p253_p3)  ;;  %s299_s8 = scalar_lea.sflag (%p253_p3), [#allocation7], %s181_s11  ;;  %s570_s25 = scalar_lea.vmem (%p253_p3), %s789_s22, 128 }
  0x43   : > { %v471_v18 = vld [vmem:[%s843_s4] ss:$0 sm:$0xff] (%p253_p3)  ;;  %p571_p4 = scmp.ne.s32.totalorder (%p253_p3), %s789_s22, %s570_s25  ;;  %s671_s15 = smov (%p253_p3), [#allocation6]  }
  0x44   : > { %v265_v4 = vsel (%p253_p3), %vm264_vm0, %v263_v3, 0.0  ;;  %v270_v5 = vmul.f32 (%p253_p3), %v263_v3, %v263_v3  ;;  %s574_s16 = sshll.u32 (%p253_p3), %s671_s15, 4  ;;  %s575_s16 = int_to_ptr.vmem [resolvable:$false] %s574_s16 }
  0x45   : > { %266 = vadd.xlane.f32.xlu0 (%p253_p3), %v265_v4  ;;  %p572_p5 = pnand (%p253_p3), %p571_p4, %p745_p9  ;;  %s576_s17 = scalar_lea.vmem (%p253_p3), %s575_s16, 256 }
  0x46   : > { %v271_v6 = vsel (%p253_p3), %vm264_vm0, %v270_v5, 0.0  ;;  %p577_p7 = scmp.lt.s32.totalorder (%p253_p3), %s789_s22, %s575_s16  ;;  %p578_p8 = scmp.lt.s32.totalorder (%p253_p3), %s576_s17, %s570_s25 }
  0x47   : > { %p573_p6 = pneg (%p253_p3), %p572_p5 }
  0x48   : > { %p579_p10 = por %p578_p8, %p577_p7 }
  0x49   : > { %272 = vadd.xlane.f32.xlu0 %v271_v6 }
  0x4a   : > { %p580_p11 = pnand %p579_p10, %p573_p6 }
  0xd2   : > { %v267_v7 = vpop.xlane.xlu0 %266 }
  0xd3   : > { %v269_v8 = vmul.f32 0.03125, %v267_v7 }
  0xd5   : > { %v275_v10 = vmul.f32 %v269_v8, %v269_v8  ;;  %v277_v14 = vsub.f32 %v263_v3, %v269_v8 }
  0xd6   : > { %v273_v9 = vpop.xlane.xlu0 %272 }
  0xd7   : > { %v274_v11 = vmul.f32 0.03125, %v273_v9 }
  0xd9   : > { %v276_v12 = vsub.f32 %v274_v11, %v275_v10 }
  0xdb   : > { %v278_v13 = vadd.f32 1e-05, %v276_v12 }
  0xdd   : > { %556 = vrsqrt.f32 %v278_v13 }
  0xe7   : > { %v557_v15 = vpop.eup %556 }
  0xe8   : > { %v280_v17 = vmul.f32 %v557_v15, %v277_v14 }
  0xea   : > { %v288_v19 = vmul.f32 %v470_v16, %v280_v17 }
  0xec   : > { %v296_v20 = vadd.f32 %v471_v18, %v288_v19 }
  0xee   : > { %297 = vst.msk [vmem:[%s183_s13] sm:$0xff] %vm264_vm0, %v296_v20 }
  0xef   : > { %583 = shalt.err (!%p580_p11)
}
  0xf0   : > { %s584_s11 = scalar_lea.hbm %s787_s6, 128  ;;  %s588_s14 = scalar_lea.hbm %s844_s5, 256 }
  0xf1   : > { %p585_p12 = scmp.ne.s32.totalorder %s787_s6, %s584_s11  ;;  %p589_p2 = scmp.lt.u32.totalorder %s787_s6, %s844_s5 }
  0xf2   : > { %p590_p3 = scmp.lt.u32.totalorder %s588_s14, %s584_s11  ;;  %p592_p5 = scmp.lt.u32.totalorder %s584_s11, %s787_s6 }
  0xf3   : > { %p586_p0 = pnand %p585_p12, %p745_p9 }
  0xf4   : > { %p591_p4 = por %p590_p3, %p589_p2 }
  0xf5   : > { %p587_p1 = pneg %p586_p0 }
  0xf6   : > { %p593_p6 = por %p592_p5, %p591_p4 }
  0xf8   : > { %p594_p7 = pnand %p593_p6, %p587_p1 }
  0xfa   : > { %597 = shalt.err (!%p594_p7)
}
  0xfb   : > { %484 = dma.vmem_to_hbm [thread:$0]  (%p745_p9), %s789_s22, 128, %s787_s6, %s299_s8  }
  0xfc PF: > { %p490_p8 = scmp.ge.s32.totalorder %s660_s27, 2  ;;  %s325_s20 = sand.u32 1, %s640_s23  }
  0xfd   : > { %s326_s21 = scalar_lea.sflag [#allocation7], %s325_s20 }
  0xfe   : > { %p487_p10 = pnand %p490_p8, %p752_p13 }
 0x100   : > { %635 = dma.done.wait (!%p487_p10), %s326_s21, 128  }
 0x101   : > { %637 = vsyncadd (!%p487_p10), %s326_s21, 4294967168  ;;  %s24_s27 = sadd.s32 1, %s660_s27   ;;  %s847_s23 = smov %s644_s24 }
 0x102   : > { %p21_p11 = scmp.ge.s32.totalorder %s24_s27, 4   ;;  %s848_s24 = smov %s648_s0 }
 0x103   : > { %s849_s0 = smov %s758_s10  ;;  %s850_s25 = smov %s656_s26 }
 0x104   : > { %s851_s26 = smov %s853_s30  ;;  %23 = sbr.rel (!%p21_p11) target bundleno = 19 (0x13), region = 154 }
 0x10b   :  { %331 = vsyncpa [#allocation7], 1 }
 0x10c   :  { %333 = vsyncpa [#allocation7 + $0x1], 1 }
 0x10d   :  { %334 = vsyncmov [#allocation3] }
 0x110   :  { %s335_s7 = vpop.sfrf %334 }
 0x111   :  { %p476_p9 = scmp.ne.s32.totalorder %s335_s7, 0 }
 0x113   :  { %339 = shalt.err (%p476_p9)  }
 0x114   :  { %341 = vsyncmov [#allocation3 + $0x1] }
 0x117   :  { %s342_s9 = vpop.sfrf %341 }
 0x118   :  { %p477_p13 = scmp.ne.s32.totalorder %s342_s9, 0 }
 0x11a   :  { %346 = shalt.err (%p477_p13)  }
 0x11b   :  { %348 = vsyncmov [#allocation3 + $0x2] }
 0x11e   :  { %s349_s22 = vpop.sfrf %348 }
 0x11f   :  { %p478_p12 = scmp.ne.s32.totalorder %s349_s22, 0 }
 0x121   :  { %353 = shalt.err (%p478_p12)  }
 0x122   :  { %355 = vsyncmov [#allocation3 + $0x3] }
 0x125   :  { %s356_s10 = vpop.sfrf %355 }
 0x126   :  { %p479_p0 = scmp.ne.s32.totalorder %s356_s10, 0 }
 0x128   :  { %360 = shalt.err (%p479_p0)  }
 0x129   :  { %362 = vsyncmov [#allocation3 + $0x4] }
 0x12c   :  { %s363_s27 = vpop.sfrf %362 }
 0x12d   :  { %p480_p1 = scmp.ne.s32.totalorder %s363_s27, 0 }
 0x12f   :  { %367 = shalt.err (%p480_p1)  }
 0x130   :  { %369 = vsyncmov [#allocation3 + $0x5] }
 0x133   :  { %s370_s1 = vpop.sfrf %369 }
 0x134   :  { %p481_p2 = scmp.ne.s32.totalorder %s370_s1, 0 }
 0x136   :  { %374 = shalt.err (%p481_p2)  }
 0x137   :  { %376 = vsyncmov [#allocation3 + $0x6] }
 0x13a   :  { %s377_s2 = vpop.sfrf %376 }
 0x13b   :  { %p482_p3 = scmp.ne.s32.totalorder %s377_s2, 0 }
 0x13d   :  { %381 = shalt.err (%p482_p3)  }
 0x13e   :  { %383 = vsyncmov [#allocation3 + $0x7] }
 0x141   :  { %s384_s3 = vpop.sfrf %383 }
 0x142   :  { %p483_p4 = scmp.ne.s32.totalorder %s384_s3, 0 }
 0x144   :  { %388 = shalt.err (%p483_p4)  }

</bundles_post_ra>
